<compile_context>
chip_gen: v6e
topology: v6e:2x2x1
jax: 0.10.0
libtpu: 0.0.40
codegen_flags: <defaults>
</compile_context>

<pallas_src>
import jax
import jax.numpy as jnp
from jax.experimental import pallas as pl
from jax.experimental.pallas import tpu as pltpu


def _round_up(x, m):
    return ((x + m - 1) // m) * m


def _conv1x1_hardsig_kernel(x_ref, w_ref, b_ref, o_ref):
    """1x1 conv channel-mix + fused hardsigmoid, VPU formulation.

    x_ref: (1, Cin, TP)   input pixels, lane-dense in the pixel axis
    w_ref: (Cout, Cin)    weights pre-scaled by 1/6
    b_ref: (Cout, 1)      bias pre-folded to (b + 3) / 6
    o_ref: (1, Cout, TP)  output pixels (hardsigmoid applied)
    """
    x = x_ref[0]            # (Cin, TP)
    w = w_ref[...]          # (Cout, Cin)
    cin = x.shape[0]

    # out[co, :] = sum_ci w[co, ci] * x[ci, :]  -- all ops on dense (Cout, TP)
    # vregs: (Cout,1) lane-broadcast * (1,TP) sublane-broadcast, then FMA.
    acc = w[:, 0:1] * x[0:1, :]                          # (Cout, TP)
    for ci in range(1, cin):
        acc = acc + w[:, ci:ci + 1] * x[ci:ci + 1, :]

    # Folded epilogue: clip(conv/6 + (b+3)/6, 0, 1)
    o_ref[0] = jnp.clip(acc + b_ref[...], 0.0, 1.0)


def conv1x1_hardsigmoid(x_nchw, weight, bias, padding=1, pixel_tile=2048):
    """x_nchw: (N, Cin, H, W); weight: (Cout, Cin, 1, 1); bias: (Cout,)."""
    n, cin, h, w = x_nchw.shape
    cout = weight.shape[0]

    # Fold the +3 / clamp / /6 epilogue into the parameters (one-time, 24+8 el).
    w_f = (weight.reshape(cout, cin) * (1.0 / 6.0)).astype(jnp.float32)
    b_f = ((bias + 3.0) * (1.0 / 6.0)).astype(jnp.float32)
    b_col = b_f.reshape(cout, 1)

    hw = h * w
    tp = min(pixel_tile, _round_up(hw, 128))     # lane-dense, 128-aligned tile
    hw_pad = _round_up(hw, tp)

    # NCHW -> (N, Cin, H*W): contiguous reshape; pixel axis becomes the lanes.
    x3 = x_nchw.reshape(n, cin, hw).astype(jnp.float32)
    if hw_pad != hw:
        x3 = jnp.pad(x3, ((0, 0), (0, 0), (0, hw_pad - hw)))

    num_p = hw_pad // tp
    out_flat = pl.pallas_call(
        _conv1x1_hardsig_kernel,
        out_shape=jax.ShapeDtypeStruct((n, cout, hw_pad), jnp.float32),
        grid_spec=pltpu.PrefetchScalarGridSpec(
            num_scalar_prefetch=0,
            grid=(n, num_p),
            in_specs=[
                pl.BlockSpec((1, cin, tp), lambda i, p: (i, 0, p)),
                pl.BlockSpec((cout, cin), lambda i, p: (0, 0)),
                pl.BlockSpec((cout, 1), lambda i, p: (0, 0)),
            ],
            out_specs=pl.BlockSpec((1, cout, tp), lambda i, p: (i, 0, p)),
        ),
        compiler_params=pltpu.CompilerParams(
            dimension_semantics=("parallel", "parallel")),
    )(x3, w_f, b_col)

    interior = out_flat[:, :, :hw].reshape(n, cout, h, w)
    if padding == 0:
        return interior

    # With a 1x1 kernel, padded border pixels see only zeros, so the fused op
    # there is exactly hardsigmoid(bias): fill the border as a per-channel
    # constant and drop the interior in (no input pad / transposes needed).
    border = jnp.clip(b_f, 0.0, 1.0).reshape(1, cout, 1, 1)
    hp, wp = h + 2 * padding, w + 2 * padding
    out = jnp.broadcast_to(border, (n, cout, hp, wp))
    out = out.at[:, :, padding:padding + h, padding:padding + w].set(interior)
    return out


if __name__ == "__main__":
    key = jax.random.PRNGKey(0)
    k_x, k_w, k_b = jax.random.split(key, 3)

    # Small shapes consistent with the module: batch=2, Cin=3, Cout=8, 16x16.
    N, CIN, COUT, H, W = 2, 3, 8, 16, 16
    x = jax.random.normal(k_x, (N, CIN, H, W), dtype=jnp.float32)

    # Deterministic Conv2d-like uniform fan-in init.
    fan_in = CIN * 1 * 1
    bound = 1.0 / (fan_in ** 0.5)
    weight = jax.random.uniform(k_w, (COUT, CIN, 1, 1), jnp.float32, -bound, bound)
    bias = jax.random.uniform(k_b, (COUT,), jnp.float32, -bound, bound)

    out = conv1x1_hardsigmoid(x, weight, bias, padding=1)
    jax.block_until_ready(out)

    # Reference check in plain JAX (same math path as the PyTorch module).
    xp = jnp.pad(x, ((0, 0), (0, 0), (1, 1), (1, 1)))
    ref = jnp.einsum("nchw,oc->nohw", xp, weight.reshape(COUT, CIN)) \
        + bias[None, :, None, None]
    ref = jnp.clip(ref + 3.0, 0.0, 6.0) / 6.0

    assert out.shape == (N, COUT, H + 2, W + 2), out.shape
    assert jnp.allclose(out, ref, atol=1e-5, rtol=1e-5)

    print("KERNEL_OK")
</pallas_src>

<mosaic_0001>
module attributes {stable_mosaic.version = 11 : i64} {
  func.func @_conv1x1_hardsig_kernel(%arg0: i32, %arg1: i32, %arg2: memref<1x3x256xf32, #tpu.memory_space<vmem>>, %arg3: memref<8x3xf32, #tpu.memory_space<vmem>>, %arg4: memref<8x1xf32, #tpu.memory_space<vmem>>, %arg5: memref<1x8x256xf32, #tpu.memory_space<vmem>>) attributes {dimension_semantics = [#tpu.dimension_semantics<parallel>, #tpu.dimension_semantics<parallel>], iteration_bounds = array<i64: 2, 1>, scalar_prefetch = 0 : i64, scratch_operands = 0 : i64, tpu.core_type = #tpu.core_type<tc>, window_params = [{transform_indices = @transform_0, window_bounds = array<i64: 1, 3, 256>}, {pipeline_mode = #tpu.pipeline_mode<synchronous>, transform_indices = @transform_1, window_bounds = array<i64: 8, 3>}, {pipeline_mode = #tpu.pipeline_mode<synchronous>, transform_indices = @transform_2, window_bounds = array<i64: 8, 1>}, {transform_indices = @transform_3, window_bounds = array<i64: 1, 8, 256>}]} {
    %c0 = arith.constant 0 : index
    %c0_0 = arith.constant 0 : index
    %c0_1 = arith.constant 0 : index
    %0 = vector.load %arg2[%c0, %c0_0, %c0_1] : memref<1x3x256xf32, #tpu.memory_space<vmem>>, vector<1x3x256xf32>
    %1 = vector.shape_cast %0 : vector<1x3x256xf32> to vector<3x256xf32>
    %c0_2 = arith.constant 0 : index
    %c0_3 = arith.constant 0 : index
    %2 = vector.load %arg3[%c0_2, %c0_3] : memref<8x3xf32, #tpu.memory_space<vmem>>, vector<8x3xf32>
    %3 = vector.extract_strided_slice %2 {offsets = [0, 0], sizes = [8, 1], strides = [1, 1]} : vector<8x3xf32> to vector<8x1xf32>
    %4 = vector.extract_strided_slice %1 {offsets = [0, 0], sizes = [1, 256], strides = [1, 1]} : vector<3x256xf32> to vector<1x256xf32>
    %5 = vector.broadcast %3 : vector<8x1xf32> to vector<8x256xf32>
    %6 = vector.broadcast %4 : vector<1x256xf32> to vector<8x256xf32>
    %7 = arith.mulf %5, %6 : vector<8x256xf32>
    %8 = vector.extract_strided_slice %2 {offsets = [0, 1], sizes = [8, 1], strides = [1, 1]} : vector<8x3xf32> to vector<8x1xf32>
    %9 = vector.extract_strided_slice %1 {offsets = [1, 0], sizes = [1, 256], strides = [1, 1]} : vector<3x256xf32> to vector<1x256xf32>
    %10 = vector.broadcast %8 : vector<8x1xf32> to vector<8x256xf32>
    %11 = vector.broadcast %9 : vector<1x256xf32> to vector<8x256xf32>
    %12 = arith.mulf %10, %11 : vector<8x256xf32>
    %13 = arith.addf %7, %12 : vector<8x256xf32>
    %14 = vector.extract_strided_slice %2 {offsets = [0, 2], sizes = [8, 1], strides = [1, 1]} : vector<8x3xf32> to vector<8x1xf32>
    %15 = vector.extract_strided_slice %1 {offsets = [2, 0], sizes = [1, 256], strides = [1, 1]} : vector<3x256xf32> to vector<1x256xf32>
    %16 = vector.broadcast %14 : vector<8x1xf32> to vector<8x256xf32>
    %17 = vector.broadcast %15 : vector<1x256xf32> to vector<8x256xf32>
    %18 = arith.mulf %16, %17 : vector<8x256xf32>
    %19 = arith.addf %13, %18 : vector<8x256xf32>
    %c0_4 = arith.constant 0 : index
    %c0_5 = arith.constant 0 : index
    %20 = vector.load %arg4[%c0_4, %c0_5] : memref<8x1xf32, #tpu.memory_space<vmem>>, vector<8x1xf32>
    %21 = vector.broadcast %20 : vector<8x1xf32> to vector<8x256xf32>
    %22 = arith.addf %19, %21 : vector<8x256xf32>
    %cst = arith.constant 0.000000e+00 : f32
    %cst_6 = arith.constant 1.000000e+00 : f32
    %23 = vector.broadcast %cst : f32 to vector<8x256xf32>
    %24 = arith.maximumf %23, %22 : vector<8x256xf32>
    %25 = vector.broadcast %cst_6 : f32 to vector<8x256xf32>
    %26 = arith.minimumf %25, %24 : vector<8x256xf32>
    %c0_7 = arith.constant 0 : index
    %c0_8 = arith.constant 0 : index
    %c0_9 = arith.constant 0 : index
    %27 = vector.load %arg5[%c0_7, %c0_8, %c0_9] : memref<1x8x256xf32, #tpu.memory_space<vmem>>, vector<1x8x256xf32>
    %28 = vector.shape_cast %27 : vector<1x8x256xf32> to vector<8x256xf32>
    %29 = vector.shape_cast %26 : vector<8x256xf32> to vector<1x8x256xf32>
    tpu.vector_store %arg5[%c0_7, %c0_8, %c0_9], %29 {strides = array<i32>} : memref<1x8x256xf32, #tpu.memory_space<vmem>>, vector<1x8x256xf32>,
    return
  }
  func.func @transform_0(%arg0: i32, %arg1: i32) -> (i32, i32, i32) {
    %c0_i32 = arith.constant 0 : i32
    %c0_i32_0 = arith.constant 0 : i32
    return %arg0, %c0_i32, %arg1 : i32, i32, i32
  }
  func.func @transform_1(%arg0: i32, %arg1: i32) -> (i32, i32) {
    %c0_i32 = arith.constant 0 : i32
    %c0_i32_0 = arith.constant 0 : i32
    %c0_i32_1 = arith.constant 0 : i32
    return %c0_i32, %c0_i32_0 : i32, i32
  }
  func.func @transform_2(%arg0: i32, %arg1: i32) -> (i32, i32) {
    %c0_i32 = arith.constant 0 : i32
    %c0_i32_0 = arith.constant 0 : i32
    %c0_i32_1 = arith.constant 0 : i32
    return %c0_i32, %c0_i32_0 : i32, i32
  }
  func.func @transform_3(%arg0: i32, %arg1: i32) -> (i32, i32, i32) {
    %c0_i32 = arith.constant 0 : i32
    %c0_i32_0 = arith.constant 0 : i32
    return %arg0, %c0_i32, %arg1 : i32, i32, i32
  }
}

</mosaic_0001>

<bundles_post_ra>
// kernel: tpu_custom_call.1
= control target key start
LH: loop header
LB: loop body
LE: loop exit
PB: predicated region body
PF: predicated region fallthrough
CT: control target
= control target key end

     0   :  { %8 = vsyncpa [#allocation3], 0  ;;  %s678_s0 = inlined_call_operand.vmem [shape: f32[2,3,256], index: 0, kind: input, shape index: {}]   ;;  %s679_s1 = inlined_call_operand.vmem [shape: f32[8,3], index: 1, kind: input, shape index: {}]   ;;  %s680_s2 = inlined_call_operand.vmem [shape: f32[8,1], index: 2, kind: input, shape index: {}]   ;;  %s681_s3 = inlined_call_operand.hbm [shape: f32[2,8,256], index: 3, kind: output, shape index: {}]  }
   0x1   :  { %10 = vsyncpa [#allocation3 + $0x1], 0  ;;  %s567_s12 = smov 0   ;;  %s569_s13 = smov 0  }
   0x2   :  { %s571_s14 = smov 0   ;;  %s573_s15 = smov 0  }
   0x3   :  { %s575_s16 = smov 0   ;;  %s577_s17 = smov 0  }
   0x4 LB: > { %s387_s18 = sadd.s32 4294967295, %s541_s17   ;;  %s388_s19 = sadd.s32 4294967294, %s541_s17   ;;  %s541_s17 = sphi %s577_s17, %s16_s17   ;;  %s537_s16 = sphi %s575_s16, %s688_s16   ;;  %s533_s15 = sphi %s573_s15, %s687_s15   ;;  %s529_s14 = sphi %s571_s14, %s686_s14   ;;  %s525_s13 = sphi %s569_s13, %s685_s13   ;;  %s521_s12 = sphi %s567_s12, %s684_s12  }
   0x5   : > { %s28_s20 = sadd.s32 1, %s537_s16  ;;  %s107_s21 = sadd.s32 1, %s529_s14 }
   0x6   : > { %p30_p0 = scmp.ge.s32.totalorder %s28_s20, 2  ;;  %p117_p1 = scmp.ne.s32.totalorder %s529_s14, %s525_s13 }
   0x7   : > { %p118_p2 = scmp.eq.s32.totalorder %s387_s18, 1  ;;  %p123_p3 = scmp.ne.s32.totalorder %s525_s13, %s521_s12 }
   0x8   : > { %s690_s20 = smov (%p30_p0, %s28_s20), 0  ;;  %p124_p5 = scmp.eq.s32.totalorder %s388_s19, 1 }
   0x9   : > { %p607_p4 = por %p118_p2, %p117_p1  ;;  %s102_s23 = ssub.s32 %s537_s16, %s690_s20 }
   0xa   : > { %p391_p6 = scmp.ge.s32.totalorder %s541_s17, 1  ;;  %p105_p7 = scmp.eq.s32.totalorder %s102_s23, 0 }
   0xb   : > { %p614_p8 = por %p124_p5, %p123_p3  ;;  %p161_p9 = scmp.lt.s32.totalorder %s541_s17, 3 }
   0xc   : > { %s620_s25 = scalar_select %p105_p7, %s529_s14, %s107_s21  }
   0xd   : > { %p162_p10 = pnand %p391_p6, %p161_p9 }
   0xe   : > { %p190_p11 = scmp.lt.s32.totalorder (!%p162_p10), %s533_s15, 1  ;;  %s186_s8 = sand.u32 (!%p162_p10), 1, %s525_s13  }
   0xf   : > { %165 = sbr.rel (%p162_p10) target bundleno = 176 (0xb0), region = 32  ;;  %s392_s9 = sshll.u32 (!%p162_p10), %s186_s8, 4 }
  0x10   : > { %s401_s10 = sshll.u32 (!%p162_p10), %s533_s15, 8  ;;  %s188_s11 = scalar_lea.vmem (!%p162_p10), [#allocation2], %s392_s9 }
  0x11   : > { %s311_s18 = sshll.u32 (!%p162_p10), %s188_s11, 4  ;;  %s638_s23 = scalar_lea.hbm (!%p162_p10), %s681_s3, %s401_s10  ;;  %s312_s18 = int_to_ptr.vmem [resolvable:$true] %s311_s18 }
  0x12   : > { %s295_s26 = scalar_lea.sflag (!%p162_p10), [#allocation3], %s186_s8  ;;  %s465_s27 = scalar_lea.vmem (!%p162_p10), %s312_s18, 256 }
  0x13   : > { %p466_p12 = scmp.ne.s32.totalorder (!%p162_p10), %s312_s18, %s465_s27 }
  0x14   : > { %v201_v0 = vld [vmem:[%s679_s1] sm:$0xff]  ;;  %v543_v1 = vmov 0   ;;  %v544_v2 = vmov 2   ;;  %v545_v4 = vmov 1   ;;  %s191_s30 = scalar_select %p190_p11, %s533_s15, 1  ;;  %v208_v5 = vlaneseq }
  0x15   : > { %460 = vset.pattern.permute.xlu0 %v543_v1  ;;  %462 = vset.pattern.permute.xlu1 %v544_v2  ;;  %v280_v3 = vld [vmem:[%s680_s2] sm:$0xff]  ;;  %p467_p13 = pnand %p466_p12, %p607_p4  ;;  %s546_s15 = smov [#allocation2]  }
  0x16   : > { %204 = vperm.xlu0 %460, %v201_v0   ;;  %255 = vperm.xlu1 %462, %v201_v0   ;;  %s400_s4 = sshll.u32 %s191_s30, 3  ;;  %v209_v6 = vshrl.u32 %v208_v5, 7  ;;  %s469_s28 = sshll.u32 %s546_s15, 4  ;;  %s470_s28 = int_to_ptr.vmem [resolvable:$false] %s469_s28 }
  0x17   : > { %s197_s7 = scalar_lea.vmem %s678_s0, %s400_s4  ;;  %p468_p0 = pneg %p467_p13 }
  0x18   : > { %v210_v7 = vsub.s32 0, %v209_v6  ;;  %v214_v8 = vsub.s32 4, %v209_v6  ;;  %v200_v9 = vld [vmem:[%s197_s7] sm:$0x77]  ;;  %v234_v10 = vsub.s32 1, %v209_v6  ;;  %v238_v11 = vsub.s32 5, %v209_v6  ;;  %p472_p1 = scmp.lt.s32.totalorder %s312_s18, %s470_s28 }
  0x19   : > { %v260_v12 = vsub.s32 2, %v209_v6  ;;  %v264_v13 = vsub.s32 6, %v209_v6  ;;  %s471_s29 = scalar_lea.vmem %s470_s28, 512 }
  0x1a   : > { %461 = vset.pattern.permute.xlu0 %v545_v4  ;;  %463 = vset.pattern.permute.xlu1 %v543_v1  ;;  %v211_v14 = vrot.slane %v200_v9, %v210_v7  ;;  %v215_v15 = vrot.slane %v200_v9, %v214_v8  ;;  %v235_v16 = vrot.slane %v200_v9, %v234_v10  ;;  %p473_p2 = scmp.lt.s32.totalorder %s471_s29, %s465_s27 }
  0x1b   : > { %229 = vperm.xlu0 %461, %v201_v0   ;;  %283 = vperm.xlu1 %463, %v280_v3   ;;  %v239_v17 = vrot.slane %v200_v9, %v238_v11  ;;  %v261_v18 = vrot.slane %v200_v9, %v260_v12  ;;  %v265_v19 = vrot.slane %v200_v9, %v264_v13 }
  0x1c   : > { %v221_v21 = vrot.slane %v211_v14, %v210_v7  ;;  %v225_v22 = vrot.slane %v215_v15, %v210_v7  ;;  %v245_v23 = vrot.slane %v235_v16, %v234_v10  ;;  %p474_p3 = por %p473_p2, %p472_p1 }
  0x1d   : > { %v249_v24 = vrot.slane %v239_v17, %v234_v10  ;;  %v271_v25 = vrot.slane %v261_v18, %v260_v12  ;;  %v275_v26 = vrot.slane %v265_v19, %v260_v12 }
  0x1e   : > { %p475_p5 = pnand %p474_p3, %p468_p0 }
  0x1f   : > { %464 = vset.pattern.permute.xlu0 %v543_v1 }
  0x91   : > { %v205_v20 = vpop.permute.xlu0 %204  ;;  %v256_v27 = vpop.permute.xlu1 %255 }
  0x92   : > { %v226_v28 = vmul.f32 %v221_v21, %v205_v20  ;;  %v227_v29 = vmul.f32 %v225_v22, %v205_v20  ;;  %v276_v33 = vmul.f32 %v271_v25, %v256_v27  ;;  %v277_v34 = vmul.f32 %v275_v26, %v256_v27 }
  0x96   : > { %v230_v30 = vpop.permute.xlu0 %229  ;;  %v284_v37 = vpop.permute.xlu1 %283 }
  0x97   : > { %v250_v31 = vmul.f32 %v245_v23, %v230_v30  ;;  %v251_v32 = vmul.f32 %v249_v24, %v230_v30 }
  0x99   : > { %v252_v35 = vadd.f32 %v250_v31, %v226_v28  ;;  %v253_v36 = vadd.f32 %v251_v32, %v227_v29 }
  0x9b   : > { %v278_v38 = vadd.f32 %v276_v33, %v252_v35  ;;  %v279_v39 = vadd.f32 %v277_v34, %v253_v36 }
  0x9d   : > { %v286_v40 = vadd.f32 %v284_v37, %v278_v38  ;;  %v287_v41 = vadd.f32 %v284_v37, %v279_v39 }
  0x9f   : > { %v288_v42 = vmax.f32 %v286_v40, 0.0  ;;  %v289_v43 = vmax.f32 %v287_v41, 0.0 }
  0xa1   : > { %v290_v44 = vmin.f32 %v288_v42, 1.0  ;;  %v291_v45 = vmin.f32 %v289_v43, 1.0 }
  0xa3   : > { %292 = vst [vmem:[%s188_s11] sm:$0xff] %v290_v44  ;;  %293 = vst [vmem:[%s188_s11 + $0x8] sm:$0xff] %v291_v45 }
  0xa4   : > { %478 = shalt.err (!%p475_p5)
}
  0xa5   : > { %s479_s30 = scalar_lea.hbm %s638_s23, 256  ;;  %s483_s6 = scalar_lea.hbm %s681_s3, 512 }
  0xa6   : > { %p480_p6 = scmp.ne.s32.totalorder %s638_s23, %s479_s30  ;;  %p484_p10 = scmp.lt.s32.totalorder %s638_s23, %s681_s3 }
  0xa7   : > { %p485_p11 = scmp.lt.s32.totalorder %s483_s6, %s479_s30 }
  0xa8   : > { %p481_p7 = pnand %p480_p6, %p607_p4 }
  0xa9   : > { %p486_p12 = por %p485_p11, %p484_p10 }
  0xaa   : > { %p482_p9 = pneg %p481_p7 }
  0xac   : > { %p487_p13 = pnand %p486_p12, %p482_p9 }
  0xae   : > { %490 = shalt.err (!%p487_p13)
}
  0xaf   : > { %402 = dma.vmem_to_hbm [thread:$0]  (%p607_p4), %s312_s18, 256, %s638_s23, %s295_s26  }
  0xb0 PF: > { %p408_p0 = scmp.ge.s32.totalorder %s541_s17, 2  ;;  %s323_s9 = sand.u32 1, %s521_s12  }
  0xb1   : > { %s324_s10 = scalar_lea.sflag [#allocation3], %s323_s9 }
  0xb2   : > { %p405_p1 = pnand %p408_p0, %p614_p8 }
  0xb4   : > { %p406_p2 = pneg %p405_p1 }
  0xb6   : > { %516 = dma.done.wait (%p406_p2), %s324_s10, 256  }
  0xb7   : > { %518 = vsyncadd (%p406_p2), %s324_s10, 4294967040  ;;  %s16_s17 = sadd.s32 1, %s541_s17   ;;  %s684_s12 = smov %s525_s13 }
  0xb8   : > { %p13_p3 = scmp.ge.s32.totalorder %s16_s17, 4   ;;  %s685_s13 = smov %s529_s14 }
  0xb9   : > { %s686_s14 = smov %s620_s25  ;;  %s687_s15 = smov %s537_s16 }
  0xba   : > { %s688_s16 = smov %s690_s20  ;;  %15 = sbr.rel (!%p13_p3) target bundleno = 4 (0x4), region = 67 }
  0xbf   :  { %329 = vsyncpa [#allocation3], 1 }
  0xc0   :  { %331 = vsyncpa [#allocation3 + $0x1], 1 }

</bundles_post_ra>
